<compile_context>
chip_gen: v7x
topology: tpu7x:2x2x1
jax: 0.10.0
libtpu: 0.0.40
codegen_flags: <defaults>
</compile_context>

<pallas_src>
import functools

import jax
import jax.numpy as jnp
import numpy as np
from jax.experimental import pallas as pl
from jax.experimental.pallas import tpu as pltpu

_BN_EPS = 1e-5
_LANE = 128


def _round_up(x, m):
    return (x + m - 1) // m * m


def _build_out_ind(num_mods):
    """Replicates the out_ind / out_count construction from __init__."""
    num_out = [[1]] + [
        [num_mods[i - 1] for _ in range(num_mods[i])] for i in range(1, len(num_mods))
    ]
    count = 0
    out_ind = []
    for i in range(len(num_out)):
        this = []
        for j in range(len(num_out[i])):
            this.append([count, count + num_out[i][j]])
            count += num_out[i][j]
        out_ind.append(this)
    return out_ind, count


def pack_params(w1, gamma, beta, w2, segments, count):
    """Pack all static operands into ONE lane-dense f32 slab (done once).

    Everything is stored at full 128-lane width (hidden dim zero-padded to
    inter_pad=128, outputs zero-padded to count_pad=128) so the kernel never
    issues a lane sub-slice.

    Row layout (slab is `count_pad` lanes wide):
      [0, tdim)                    : W1  (tdim, inter_pad)      zero-padded lanes
      tdim                         : gamma (inter_pad,)          zero-padded lanes
      tdim + 1                     : beta  (inter_pad,)          zero-padded lanes
      [w2_row, w2_row + inter_pad) : W2    (inter_pad, count_pad) zero-padded rows/cols
      [s_row,  s_row + count_pad)  : block-diagonal 0/1 segment matrix S
    """
    tdim, inter = w1.shape
    assert w2.shape == (inter, count)
    inter_pad = _round_up(inter, _LANE)
    count_pad = _round_up(count, _LANE)
    # Demo-scale assumption: one 128-lane block for both padded dims so every
    # load is full slab width.  (Generalizing to >128 just widens the slab.)
    assert inter_pad == count_pad, "slab layout assumes inter_pad == count_pad"

    w2_row = _round_up(tdim + 2, 8)              # keep W2 sublane-aligned
    s_row = _round_up(w2_row + inter_pad, 8)     # keep S sublane-aligned
    rows = _round_up(s_row + count_pad, 8)

    slab = np.zeros((rows, count_pad), np.float32)
    slab[0:tdim, 0:inter] = np.asarray(w1, np.float32)
    slab[tdim, 0:inter] = np.asarray(gamma, np.float32)
    slab[tdim + 1, 0:inter] = np.asarray(beta, np.float32)
    slab[w2_row:w2_row + inter, 0:count] = np.asarray(w2, np.float32)

    # Block-diagonal segment-sum matrix: S[i, j] = 1 iff i, j in the same segment.
    S = np.zeros((count_pad, count_pad), np.float32)
    for (s, e) in segments:
        S[s:e, s:e] = 1.0
    # Padding lanes form their own group so their denominator is non-zero
    # (their probabilities are sliced off by the consumer anyway).
    S[count:, count:] = 1.0
    slab[s_row:s_row + count_pad, :] = S

    layout = dict(tdim=int(tdim), inter_pad=int(inter_pad),
                  count_pad=int(count_pad), w2_row=int(w2_row), s_row=int(s_row))
    return jnp.asarray(slab), layout


def _gating_kernel(x_ref, p_ref, prob_ref, logit_ref, *,
                   tdim, inter_pad, count_pad, w2_row, s_row):
    """Whole forward in one kernel invocation (no grid; tiny shapes)."""
    x = x_ref[...]                                      # (B, tdim) f32

    # --- unpack the parameter slab: all loads are full 128-lane width ---------
    w1 = p_ref[0:tdim, :]                               # (tdim, inter_pad)
    gamma = p_ref[tdim:tdim + 1, :]                     # (1, inter_pad)
    beta = p_ref[tdim + 1:tdim + 2, :]                  # (1, inter_pad)
    w2 = p_ref[w2_row:w2_row + inter_pad, :]            # (inter_pad, count_pad)
    seg_mat = p_ref[s_row:s_row + count_pad, :]         # (count_pad, count_pad)

    # --- task_linear1 (bias=False) on the MXU ---------------------------------
    h = jnp.dot(x, w1, preferred_element_type=jnp.float32)        # (B, inter_pad)

    # --- BatchNorm1d (training batch stats), fused affine, folded ReLU --------
    # Padded lanes: h == 0, gamma == 0, beta == 0  ->  a == 0 (numerics unchanged).
    mean = jnp.mean(h, axis=0, keepdims=True)                     # (1, inter_pad)
    ctr = h - mean
    var = jnp.mean(ctr * ctr, axis=0, keepdims=True)              # biased var
    scale = gamma * jax.lax.rsqrt(var + _BN_EPS)                  # (1, inter_pad)
    a = jnp.maximum(ctr * scale + beta, 0.0)                      # ReLU

    # --- joint_linear2 (bias=False) on the MXU; lane-dense output -------------
    logits = jnp.dot(a, w2, preferred_element_type=jnp.float32)   # (B, count_pad)
    logit_ref[...] = logits

    # --- segment-wise softmax, single pass -------------------------------------
    # softmax is shift-invariant per segment, so one row-global max is valid for
    # every segment; per-segment denominators come from one MXU matmul against
    # the static block-diagonal 0/1 matrix.  Exact division (EUP slot is idle).
    # NOTE: if a segment's logits were ever ~80+ below the row-global max, its
    # exp would underflow to 0/0; fine for the module's 0.1-scale init.
    m = jnp.max(logits, axis=-1, keepdims=True)                   # (B, 1)
    ex = jnp.exp(logits - m)                                      # one EUP pass
    denom = jnp.dot(ex, seg_mat, preferred_element_type=jnp.float32)
    prob_ref[...] = ex / denom


def general_gating_forward(tdesc, param_slab, layout):
    """Single pallas_call. Returns lane-dense (B, count_pad) prob / logits."""
    if tdesc is None:
        return None
    B, tdim = tdesc.shape
    inter_pad = layout["inter_pad"]
    count_pad = layout["count_pad"]
    kernel = functools.partial(_gating_kernel, **layout)

    # Advisory cost hint so XLA schedules/overlaps around this tiny custom call.
    flops = 2 * B * (tdim * inter_pad + inter_pad * count_pad + count_pad * count_pad)
    bytes_accessed = (param_slab.size + tdesc.size + 2 * B * count_pad) * 4
    cost = pl.CostEstimate(flops=flops, transcendentals=B * count_pad,
                           bytes_accessed=bytes_accessed)

    vmem = pl.BlockSpec(memory_space=pltpu.MemorySpace.VMEM)
    prob, logits = pl.pallas_call(
        kernel,
        out_shape=(
            jax.ShapeDtypeStruct((B, count_pad), jnp.float32),
            jax.ShapeDtypeStruct((B, count_pad), jnp.float32),
        ),
        in_specs=[vmem, vmem],
        out_specs=(vmem, vmem),
        cost_estimate=cost,
    )(tdesc, param_slab)
    return prob, logits


def split_gating_outputs(prob_full, logits_full, out_ind):
    """Consumer-side nested-list view matching the PyTorch module's return.

    Works on device arrays or host numpy; kept out of the hot wrapper so the
    kernel call dispatches no per-segment slices.
    """
    prob_g = [[prob_full[:, s:e] for (s, e) in grp] for grp in out_ind]
    gating_wt = [[logits_full[:, s:e] for (s, e) in grp] for grp in out_ind]
    return prob_g, gating_wt


def _ref_forward(x, w1, gamma, beta, w2, out_ind):
    """Pure-JAX reference for correctness checking."""
    h = x @ w1
    mean = h.mean(0, keepdims=True)
    var = ((h - mean) ** 2).mean(0, keepdims=True)
    h_bn = (h - mean) / jnp.sqrt(var + _BN_EPS) * gamma[None, :] + beta[None, :]
    a = jnp.maximum(h_bn, 0.0)
    logits = a @ w2
    prob_g = [[jax.nn.softmax(logits[:, s:e], axis=-1) for (s, e) in grp]
              for grp in out_ind]
    gating_wt = [[logits[:, s:e] for (s, e) in grp] for grp in out_ind]
    return prob_g, gating_wt


if __name__ == "__main__":
    # Small, module-consistent shapes.
    num_mods = [2, 3, 2]
    tdim, inter_tdim = 16, 32
    batch = 8
    randinit = True  # random joint_linear2 weights (randinit=False would zero them)

    out_ind, count = _build_out_ind(num_mods)   # count = 13 for num_mods=[2,3,2]
    segments = tuple((int(s), int(e)) for grp in out_ind for (s, e) in grp)

    key = jax.random.PRNGKey(0)
    kx, k1, k2 = jax.random.split(key, 3)

    # Deterministic init mirroring apply_init: Linear ~ N(0, 0.1), BN gamma=1, beta=0.
    # PyTorch Linear stores weight as (out, in); we store the transpose (in, out).
    w1 = 0.1 * jax.random.normal(k1, (tdim, inter_tdim), jnp.float32)
    if randinit:
        w2 = 0.1 * jax.random.normal(k2, (inter_tdim, count), jnp.float32)
    else:
        w2 = jnp.zeros((inter_tdim, count), jnp.float32)
    gamma = jnp.ones((inter_tdim,), jnp.float32)
    beta = jnp.zeros((inter_tdim,), jnp.float32)

    # One-time parameter packing (single weight/BN/segment-matrix DMA per call).
    param_slab, layout = pack_params(w1, gamma, beta, w2, segments, count)

    tdesc = jax.random.normal(kx, (batch, tdim), jnp.float32)

    prob_full, logits_full = general_gating_forward(tdesc, param_slab, layout)
    jax.block_until_ready((prob_full, logits_full))

    # Consumer-side split, done on host numpy (no per-slice device dispatches).
    prob_np = np.asarray(prob_full)[:, :count]
    logits_np = np.asarray(logits_full)[:, :count]
    prob_g, gating_wt = split_gating_outputs(prob_np, logits_np, out_ind)

    # Verify against the pure-JAX reference (exact division -> tight tolerance).
    ref_prob, ref_wt = _ref_forward(tdesc, w1, gamma, beta, w2, out_ind)
    for i in range(len(out_ind)):
        for j in range(len(out_ind[i])):
            np.testing.assert_allclose(np.asarray(prob_g[i][j]),
                                       np.asarray(ref_prob[i][j]),
                                       rtol=1e-4, atol=1e-5)
            np.testing.assert_allclose(np.asarray(gating_wt[i][j]),
                                       np.asarray(ref_wt[i][j]),
                                       rtol=1e-4, atol=1e-5)

    print("KERNEL_OK")
</pallas_src>

<mosaic_0001>
module attributes {stable_mosaic.version = 11 : i64} {
  func.func @_gating_kernel(%arg0: memref<8x16xf32, #tpu.memory_space<vmem>>, %arg1: memref<280x128xf32, #tpu.memory_space<vmem>>, %arg2: memref<8x128xf32, #tpu.memory_space<vmem>>, %arg3: memref<8x128xf32, #tpu.memory_space<vmem>>) attributes {dimension_semantics = [], scalar_prefetch = 0 : i64, scratch_operands = 0 : i64, tpu.core_type = #tpu.core_type<tc>} {
    %c0 = arith.constant 0 : index
    %c0_0 = arith.constant 0 : index
    %0 = vector.load %arg0[%c0, %c0_0] : memref<8x16xf32, #tpu.memory_space<vmem>>, vector<8x16xf32>
    %c0_1 = arith.constant 0 : index
    %c0_2 = arith.constant 0 : index
    %1 = vector.load %arg1[%c0_1, %c0_2] : memref<280x128xf32, #tpu.memory_space<vmem>>, vector<16x128xf32>
    %c16 = arith.constant 16 : index
    %c0_3 = arith.constant 0 : index
    %2 = vector.load %arg1[%c16, %c0_3] : memref<280x128xf32, #tpu.memory_space<vmem>>, vector<1x128xf32>
    %c17 = arith.constant 17 : index
    %c0_4 = arith.constant 0 : index
    %3 = vector.load %arg1[%c17, %c0_4] : memref<280x128xf32, #tpu.memory_space<vmem>>, vector<1x128xf32>
    %c24 = arith.constant 24 : index
    %c0_5 = arith.constant 0 : index
    %4 = vector.load %arg1[%c24, %c0_5] : memref<280x128xf32, #tpu.memory_space<vmem>>, vector<128x128xf32>
    %c152 = arith.constant 152 : index
    %c0_6 = arith.constant 0 : index
    %5 = vector.load %arg1[%c152, %c0_6] : memref<280x128xf32, #tpu.memory_space<vmem>>, vector<128x128xf32>
    %cst = arith.constant dense<0.000000e+00> : vector<8x128xf32>
    %6 = tpu.matmul %0, %1, %cst {dimension_numbers = #tpu.dot_dimension_numbers<[1], [0], [0], [1], [0, 0, 1, 1], [], []>} : vector<8x16xf32>, vector<16x128xf32>, vector<8x128xf32> -> vector<8x128xf32>
    %cst_7 = arith.constant dense<0.000000e+00> : vector<128xf32>
    %7 = vector.multi_reduction <add>, %6, %cst_7 [0] : vector<8x128xf32> to vector<128xf32>
    %8 = vector.shape_cast %7 : vector<128xf32> to vector<1x128xf32>
    %cst_8 = arith.constant 8.000000e+00 : f32
    %9 = vector.broadcast %cst_8 : f32 to vector<1x128xf32>
    %10 = arith.divf %8, %9 : vector<1x128xf32>
    %11 = vector.broadcast %10 : vector<1x128xf32> to vector<8x128xf32>
    %12 = arith.subf %6, %11 : vector<8x128xf32>
    %13 = arith.mulf %12, %12 : vector<8x128xf32>
    %cst_9 = arith.constant dense<0.000000e+00> : vector<128xf32>
    %14 = vector.multi_reduction <add>, %13, %cst_9 [0] : vector<8x128xf32> to vector<128xf32>
    %15 = vector.shape_cast %14 : vector<128xf32> to vector<1x128xf32>
    %cst_10 = arith.constant 8.000000e+00 : f32
    %16 = vector.broadcast %cst_10 : f32 to vector<1x128xf32>
    %17 = arith.divf %15, %16 : vector<1x128xf32>
    %cst_11 = arith.constant 9.99999974E-6 : f32
    %18 = vector.broadcast %cst_11 : f32 to vector<1x128xf32>
    %19 = arith.addf %17, %18 : vector<1x128xf32>
    %20 = math.rsqrt %19 : vector<1x128xf32>
    %21 = arith.mulf %2, %20 : vector<1x128xf32>
    %22 = vector.broadcast %21 : vector<1x128xf32> to vector<8x128xf32>
    %23 = arith.mulf %12, %22 : vector<8x128xf32>
    %24 = vector.broadcast %3 : vector<1x128xf32> to vector<8x128xf32>
    %25 = arith.addf %23, %24 : vector<8x128xf32>
    %cst_12 = arith.constant 0.000000e+00 : f32
    %26 = vector.broadcast %cst_12 : f32 to vector<8x128xf32>
    %27 = arith.maximumf %25, %26 : vector<8x128xf32>
    %cst_13 = arith.constant dense<0.000000e+00> : vector<8x128xf32>
    %28 = tpu.matmul %27, %4, %cst_13 {dimension_numbers = #tpu.dot_dimension_numbers<[1], [0], [0], [1], [0, 0, 1, 1], [], []>} : vector<8x128xf32>, vector<128x128xf32>, vector<8x128xf32> -> vector<8x128xf32>
    %c0_14 = arith.constant 0 : index
    %c0_15 = arith.constant 0 : index
    %29 = vector.load %arg3[%c0_14, %c0_15] : memref<8x128xf32, #tpu.memory_space<vmem>>, vector<8x128xf32>
    tpu.vector_store %arg3[%c0_14, %c0_15], %28 {strides = array<i32>} : memref<8x128xf32, #tpu.memory_space<vmem>>, vector<8x128xf32>,
    %cst_16 = arith.constant dense<0xFF800000> : vector<8xf32>
    %30 = vector.multi_reduction <maximumf>, %28, %cst_16 [1] : vector<8x128xf32> to vector<8xf32>
    %31 = vector.shape_cast %30 : vector<8xf32> to vector<8x1xf32>
    %32 = vector.broadcast %31 : vector<8x1xf32> to vector<8x128xf32>
    %33 = arith.subf %28, %32 : vector<8x128xf32>
    %34 = math.exp %33 : vector<8x128xf32>
    %cst_17 = arith.constant dense<0.000000e+00> : vector<8x128xf32>
    %35 = tpu.matmul %34, %5, %cst_17 {dimension_numbers = #tpu.dot_dimension_numbers<[1], [0], [0], [1], [0, 0, 1, 1], [], []>} : vector<8x128xf32>, vector<128x128xf32>, vector<8x128xf32> -> vector<8x128xf32>
    %36 = arith.divf %34, %35 : vector<8x128xf32>
    %c0_18 = arith.constant 0 : index
    %c0_19 = arith.constant 0 : index
    %37 = vector.load %arg2[%c0_18, %c0_19] : memref<8x128xf32, #tpu.memory_space<vmem>>, vector<8x128xf32>
    tpu.vector_store %arg2[%c0_18, %c0_19], %36 {strides = array<i32>} : memref<8x128xf32, #tpu.memory_space<vmem>>, vector<8x128xf32>,
    return
  }
}

</mosaic_0001>

<bundles_post_ra>
// kernel: tpu_custom_call.1
= control target key start
LH: loop header
LB: loop body
LE: loop exit
PB: predicated region body
PF: predicated region fallthrough
CT: control target
= control target key end

     0   :  { %9 = vsyncpa [#allocation3], 0  ;;  %s741_s0 = inlined_call_operand.hbm [shape: f32[8,16], index: 0, kind: input, shape index: {}]   ;;  %s742_s1 = inlined_call_operand.hbm [shape: f32[280,128], index: 1, kind: input, shape index: {}]   ;;  %s743_s2 = inlined_call_operand.hbm [shape: f32[8,128], index: 2, kind: output, shape index: {0}]   ;;  %s744_s3 = inlined_call_operand.hbm [shape: f32[8,128], index: 3, kind: output, shape index: {1}]  }
   0x1   :  { %10 = vsyncpa [#allocation6], 0 }
   0x2   :  { %11 = vsyncpa [#allocation4], 0 }
   0x3   :  { %12 = vsyncpa [#allocation9], 0  ;;  %s640_s12 = smov [#allocation2]   ;;  %s641_s14 = smov [#allocation5]  }
   0x4   :  { %s19_s13 = sshll.u32 %s640_s12, 4  ;;  %s28_s15 = sshll.u32 %s641_s14, 4  ;;  %s20_s13 = int_to_ptr.vmem [resolvable:$true] %s19_s13  ;;  %s669_s15 = int_to_ptr.vmem [resolvable:$true] %s28_s15 }
   0x5   :  { %s544_s18 = scalar_lea.hbm %s741_s0, 128 }
   0x6   :  { %p545_p0 = scmp.ne.s32.totalorder %s741_s0, %s544_s18  ;;  %p548_p1 = scmp.lt.u32.totalorder %s544_s18, %s741_s0 }
   0x8   :  { %p550_p2 = pnand %p548_p1, %p545_p0 }
   0xa   :  { %553 = shalt.err (!%p550_p2)
}
   0xb   :  { %s554_s23 = scalar_lea.vmem %s20_s13, 128  ;;  %p559_p4 = scmp.lt.s32.totalorder %s20_s13, %s20_s13 }
   0xc   :  { %p555_p3 = scmp.ne.s32.totalorder %s20_s13, %s554_s23  ;;  %p560_p5 = scmp.lt.s32.totalorder %s554_s23, %s554_s23 }
   0xe   :  { %p561_p6 = por %p560_p5, %p559_p4 }
  0x10   :  { %p562_p7 = pnand %p561_p6, %p555_p3 }
  0x12   :  { %565 = shalt.err (!%p562_p7)
}
  0x13   :  { %22 = dma.hbm_to_vmem [thread:$0]  %s741_s0, 128, %s20_s13, [#allocation3]  }
  0x14   :  { %s566_s28 = scalar_lea.hbm %s742_s1, 4480 }
  0x15   :  { %p567_p8 = scmp.ne.s32.totalorder %s742_s1, %s566_s28  ;;  %p570_p9 = scmp.lt.u32.totalorder %s566_s28, %s742_s1 }
  0x17   :  { %p572_p10 = pnand %p570_p9, %p567_p8 }
  0x19   :  { %575 = shalt.err (!%p572_p10)
}
  0x1a   :  { %s576_s6 = scalar_lea.vmem %s669_s15, 4480  ;;  %p581_p12 = scmp.lt.s32.totalorder %s669_s15, %s669_s15 }
  0x1b   :  { %p577_p11 = scmp.ne.s32.totalorder %s669_s15, %s576_s6  ;;  %p582_p13 = scmp.lt.s32.totalorder %s576_s6, %s576_s6 }
  0x1d   :  { %p583_p0 = por %p582_p13, %p581_p12 }
  0x1f   :  { %p584_p1 = pnand %p583_p0, %p577_p11 }
  0x21   :  { %587 = shalt.err (!%p584_p1)
}
  0x22   :  { %s642_s0 = smov 128   ;;  %s643_s7 = smov 8  }
  0x23   :  { %34 = dma.hbm_to_vmem [thread:$0]  %s742_s1, 4480, %s669_s15, [#allocation6], %s642_s0, %s642_s0, %s643_s7  }
  0x24   :  { %632 = dma.done.wait [#allocation3], 128  }
  0x25   :  { %633 = vsyncadd [#allocation3], 4294967168 }
  0x26   :  { %634 = dma.done.wait [#allocation6], 4480  }
  0x27   :  { %635 = vsyncadd [#allocation6], 4294962816  ;;  %v644_v0 = vmov 0.0|0.0   ;;  %vm645_vm0 = vmmov 0   ;;  %v646_v1 = vmov 0.0   ;;  %v42_v2 = vld [vmem:[#allocation5] sm:$0xff]  ;;  %v172_v49 = vlaneseq }
  0x28   :  { %478 = vmatprep.subr.bf16.mxu0 %v644_v0  ;;  %405 = vmatprep.mubr.msk.f32.mxu0 %vm645_vm0, %v646_v1  ;;  %v43_v3 = vld [vmem:[#allocation5 + $0x8] sm:$0xff]  ;;  %v41_v5 = vld [vmem:[#allocation2] sm:$0xff]  ;;  %vm78_vm1 = vcmask 130048   ;;  %v47_v7 = vld [vmem:[#allocation5 + $0x20] sm:$0xff]  ;;  %s647_s1 = smov [#allocation8]  }
  0x29   :  { %481 = vmatprep.subr.bf16.mxu1 %v644_v0  ;;  %440 = vmatprep.mubr.msk.f32.mxu1 %vm645_vm0, %v646_v1  ;;  %v479_v4 = vpack.c.bf16 %v43_v3, %v42_v2  ;;  %v46_v6 = vld [vmem:[#allocation5 + $0x18] sm:$0xff]  ;;  %v48_v9 = vld [vmem:[#allocation5 + $0x28] sm:$0xff]  ;;  %v49_v10 = vld [vmem:[#allocation5 + $0x30] sm:$0xff]  ;;  %v173_v50 = vshrl.u32 %v172_v49, 7  ;;  %s348_s10 = sshll.u32 %s647_s1, 4  ;;  %s349_s10 = int_to_ptr.vmem [resolvable:$true] %s348_s10 }
  0x2a   :  { %v482_v8 = vpack.c.bf16 %v47_v7, %v46_v6  ;;  %v485_v11 = vpack.c.bf16 %v49_v10, %v48_v9  ;;  %v50_v12 = vld [vmem:[#allocation5 + $0x38] sm:$0xff]  ;;  %v51_v13 = vld [vmem:[#allocation5 + $0x40] sm:$0xff]  ;;  %v52_v15 = vld [vmem:[#allocation5 + $0x48] sm:$0xff]  ;;  %s588_s11 = scalar_lea.vmem %s349_s10, 128  ;;  %p593_p3 = scmp.lt.s32.totalorder %s349_s10, %s349_s10 }
  0x2b   :  { %480 = vmatpush3.bf16.msra.mxu0 %v479_v4  ;;  %v488_v14 = vpack.c.bf16 %v51_v13, %v50_v12  ;;  %v53_v16 = vld [vmem:[#allocation5 + $0x50] sm:$0xff]  ;;  %v54_v18 = vld [vmem:[#allocation5 + $0x58] sm:$0xff]  ;;  %v55_v19 = vld [vmem:[#allocation5 + $0x60] sm:$0xff]  ;;  %v174_v52 = vsub.s32 0, %v173_v50  ;;  %p589_p2 = scmp.ne.s32.totalorder %s349_s10, %s588_s11  ;;  %p594_p4 = scmp.lt.s32.totalorder %s588_s11, %s588_s11 }
  0x2c   :  { %505 = vmatprep.subr.bf16.mxu0 %v644_v0  ;;  %483 = vmatpush3.bf16.msra.mxu1 %v482_v8  ;;  %v491_v17 = vpack.c.bf16 %v53_v16, %v52_v15  ;;  %v494_v20 = vpack.c.bf16 %v55_v19, %v54_v18  ;;  %v56_v21 = vld [vmem:[#allocation5 + $0x68] sm:$0xff]  ;;  %v57_v22 = vld [vmem:[#allocation5 + $0x70] sm:$0xff]  ;;  %v58_v24 = vld [vmem:[#allocation5 + $0x78] sm:$0xff] }
  0x2d   :  { %484 = vmatprep.subr.bf16.mxu1 %v644_v0  ;;  %v497_v23 = vpack.c.bf16 %v57_v22, %v56_v21  ;;  %v59_v25 = vld [vmem:[#allocation5 + $0x80] sm:$0xff]  ;;  %v60_v27 = vld [vmem:[#allocation5 + $0x88] sm:$0xff]  ;;  %v61_v28 = vld [vmem:[#allocation5 + $0x90] sm:$0xff]  ;;  %p595_p5 = por %p594_p4, %p593_p3 }
  0x2e   :  { %406 = vmatmul.mubr.msk.f32.vlgmr.msra.gmra.mrb[0].mxu0 %vm78_vm1, %v41_v5  ;;  %v500_v26 = vpack.c.bf16 %v59_v25, %v58_v24  ;;  %v503_v29 = vpack.c.bf16 %v61_v28, %v60_v27  ;;  %v44_v51 = vld [vmem:[#allocation5 + $0x10] sm:$0x1]  ;;  %v363_v56 = vld [vmem:[#allocation5 + $0x11] ss:$0 sm:$0xff]  ;;  %v62_v60 = vld [vmem:[#allocation5 + $0x98] sm:$0xff] }
  0x2f   :  { %475 = vmatprep.mubr.msk.f32.mxu0 %vm645_vm0, %v646_v1  ;;  %v63_v61 = vld [vmem:[#allocation5 + $0xa0] sm:$0xff]  ;;  %v64_v62 = vld [vmem:[#allocation5 + $0xa8] sm:$0xff]  ;;  %v65_v1 = vld [vmem:[#allocation5 + $0xb0] sm:$0xff]  ;;  %p596_p6 = pnand %p595_p5, %p589_p2 }
  0x30   :  { %486 = vmatpush3.bf16.msra.mxu1 %v485_v11  ;;  %v506_v63 = vpack.c.bf16 %v63_v61, %v62_v60  ;;  %v509_v2 = vpack.c.bf16 %v65_v1, %v64_v62  ;;  %v66_v3 = vld [vmem:[#allocation5 + $0xb8] sm:$0xff]  ;;  %v67_v4 = vld [vmem:[#allocation5 + $0xc0] sm:$0xff]  ;;  %v68_v6 = vld [vmem:[#allocation5 + $0xc8] sm:$0xff] }
  0x31   :  { %487 = vmatprep.subr.bf16.mxu1 %v644_v0  ;;  %v512_v5 = vpack.c.bf16 %v67_v4, %v66_v3  ;;  %v69_v7 = vld [vmem:[#allocation5 + $0xd0] sm:$0xff]  ;;  %v70_v11 = vld [vmem:[#allocation5 + $0xd8] sm:$0xff]  ;;  %v71_v12 = vld [vmem:[#allocation5 + $0xe0] sm:$0xff] }
  0x32   :  { %507 = vmatpush3.bf16.msra.mxu0 %v506_v63  ;;  %v515_v8 = vpack.c.bf16 %v69_v7, %v68_v6  ;;  %v518_v13 = vpack.c.bf16 %v71_v12, %v70_v11  ;;  %v73_v15 = vld [vmem:[#allocation5 + $0xf0] sm:$0xff]  ;;  %v75_v18 = vld [vmem:[#allocation5 + $0x100] sm:$0xff] }
  0x33   :  { %508 = vmatprep.subr.bf16.mxu0 %v644_v0  ;;  %v77_v21 = vld [vmem:[#allocation5 + $0x110] sm:$0xff] }
  0x34   :  { %489 = vmatpush3.bf16.msra.mxu1 %v488_v14  ;;  %v72_v14 = vld [vmem:[#allocation5 + $0xe8] sm:$0xff] }
  0x35   :  { %490 = vmatprep.subr.bf16.mxu1 %v644_v0  ;;  %v521_v16 = vpack.c.bf16 %v73_v15, %v72_v14 }
  0x36   :  { %510 = vmatpush3.bf16.msra.mxu0 %v509_v2 }
  0x37   :  { %511 = vmatprep.subr.bf16.mxu0 %v644_v0 }
  0x38   :  { %492 = vmatpush3.bf16.msra.mxu1 %v491_v17  ;;  %v74_v17 = vld [vmem:[#allocation5 + $0xf8] sm:$0xff] }
  0x39   :  { %493 = vmatprep.subr.bf16.mxu1 %v644_v0  ;;  %v524_v19 = vpack.c.bf16 %v75_v18, %v74_v17 }
  0x3a   :  { %513 = vmatpush3.bf16.msra.mxu0 %v512_v5 }
  0x3b   :  { %514 = vmatprep.subr.bf16.mxu0 %v644_v0 }
  0x3c   :  { %495 = vmatpush3.bf16.msra.mxu1 %v494_v20  ;;  %v76_v20 = vld [vmem:[#allocation5 + $0x108] sm:$0xff] }
  0x3d   :  { %496 = vmatprep.subr.bf16.mxu1 %v644_v0  ;;  %v527_v22 = vpack.c.bf16 %v77_v21, %v76_v20 }
  0x3e   :  { %516 = vmatpush3.bf16.msra.mxu0 %v515_v8 }
  0x3f   :  { %517 = vmatprep.subr.bf16.mxu0 %v644_v0 }
  0x40   :  { %498 = vmatpush3.bf16.msra.mxu1 %v497_v23 }
  0x41   :  { %499 = vmatprep.subr.bf16.mxu1 %v644_v0 }
  0x42   :  { %519 = vmatpush3.bf16.msra.mxu0 %v518_v13 }
  0x43   :  { %520 = vmatprep.subr.bf16.mxu0 %v644_v0 }
  0x44   :  { %501 = vmatpush3.bf16.msra.mxu1 %v500_v26 }
  0x45   :  { %502 = vmatprep.subr.bf16.mxu1 %v644_v0 }
  0x46   :  { %522 = vmatpush3.bf16.msra.mxu0 %v521_v16 }
  0x47   :  { %523 = vmatprep.subr.bf16.mxu0 %v644_v0 }
  0x48   :  { %504 = vmatpush3.bf16.msra.mxu1 %v503_v29 }
  0x4a   :  { %525 = vmatpush3.bf16.msra.mxu0 %v524_v19 }
  0x4b   :  { %526 = vmatprep.subr.bf16.mxu0 %v644_v0 }
  0x4e   :  { %528 = vmatpush3.bf16.msra.mxu0 %v527_v22 }
 0x101   :  { %v148_v30 = vpop.f32.mrb[0].mxu0 }
 0x102   :  { %v152_v31 = vrot.slane %v148_v30, 4  ;;  %v407_v32 = vpop.f32.mrb[1].mxu0 }
 0x104   :  { %v153_v33 = vadd.f32 %v152_v31, %v148_v30 }
 0x106   :  { %v154_v34 = vrot.slane %v153_v33, 2 }
 0x108   :  { %v155_v35 = vadd.f32 %v154_v34, %v153_v33 }
 0x10a   :  { %v156_v36 = vrot.slane %v155_v35, 1 }
 0x10c   :  { %v157_v37 = vadd.f32 %v156_v36, %v155_v35 }
 0x10e   :  { %v159_v38 = vmul.f32 0.125, %v157_v37 }
 0x110   :  { %v160_v39 = vsub.f32 %v148_v30, %v159_v38 }
 0x112   :  { %v161_v40 = vmul.f32 %v160_v39, %v160_v39 }
 0x114   :  { %v162_v41 = vrot.slane %v161_v40, 4 }
 0x116   :  { %v163_v42 = vadd.f32 %v162_v41, %v161_v40 }
 0x118   :  { %v164_v43 = vrot.slane %v163_v42, 2 }
 0x11a   :  { %v165_v44 = vadd.f32 %v164_v43, %v163_v42 }
 0x11c   :  { %v166_v45 = vrot.slane %v165_v44, 1 }
 0x11e   :  { %v167_v46 = vadd.f32 %v166_v45, %v165_v44 }
 0x120   :  { %v168_v47 = vmul.f32 0.125, %v167_v46 }
 0x122   :  { %v169_v48 = vadd.f32 1e-05, %v168_v47 }
 0x124   :  { %538 = vrsqrt.f32 %v169_v48 }
 0x12e   :  { %v539_v53 = vpop.eup %538 }
 0x12f   :  { %v171_v54 = vmul.f32 %v539_v53, %v44_v51 }
 0x131   :  { %v175_v55 = vrot.slane %v171_v54, %v174_v52 }
 0x133   :  { %v176_v57 = vmul.f32 %v175_v55, %v160_v39 }
 0x135   :  { %v181_v58 = vadd.f32 %v363_v56, %v176_v57 }
 0x137   :  { %v182_v59 = vmax.f32 %v181_v58, 0.0 }
 0x139   :  { %441 = vmatmul.mubr.f32.vlgmr.msra.gmra.mrb[0].mxu1 %v182_v59 }
 0x20c   :  { %v249_v9 = vpop.f32.mrb[0].mxu1 }
 0x20d   :  { %253 = vst [vmem:[#allocation8] sm:$0xff] %v249_v9  ;;  %v442_v10 = vpop.f32.mrb[1].mxu1  ;;  %254 = vmax.xlane.f32.xlu0 %v249_v9 }
 0x29a   :  { %v255_v23 = vpop.xlane.xlu0 %254 }
 0x29b   :  { %v256_v24 = vsub.f32 %v249_v9, %v255_v23 }
 0x29d   :  { %v257_v25 = vmul.f32 1.442695, %v256_v24 }
 0x29f   :  { %540 = vpow2.f32 %v257_v25 }
 0x2a9   :  { %v541_v26 = vpop.eup %540 }
 0x2aa   :  { %476 = vmatmul.mubr.f32.vlgmr.msra.gmra.mrb[2].mxu0 %v541_v26 }
 0x2ab   :  { %599 = shalt.err (!%p596_p6)
}
 0x2ac   :  { %s600_s14 = scalar_lea.hbm %s744_s3, 128 }
 0x2ad   :  { %p601_p7 = scmp.ne.s32.totalorder %s744_s3, %s600_s14  ;;  %p604_p8 = scmp.lt.u32.totalorder %s600_s14, %s744_s3 }
 0x2af   :  { %p606_p9 = pnand %p604_p8, %p601_p7 }
 0x2b1   :  { %609 = shalt.err (!%p606_p9)
}
 0x2b2   :  { %351 = dma.vmem_to_hbm [thread:$0]  %s349_s10, 128, %s744_s3, [#allocation9]  }
 0x2b3   :  { %s648_s21 = smov [#allocation7]  }
 0x2b4   :  { %s338_s22 = sshll.u32 %s648_s21, 4  ;;  %s339_s22 = int_to_ptr.vmem [resolvable:$true] %s338_s22 }
 0x2b5   :  { %s610_s23 = scalar_lea.vmem %s339_s22, 128  ;;  %p615_p11 = scmp.lt.s32.totalorder %s339_s22, %s339_s22 }
 0x2b6   :  { %p611_p10 = scmp.ne.s32.totalorder %s339_s22, %s610_s23  ;;  %p616_p12 = scmp.lt.s32.totalorder %s610_s23, %s610_s23 }
 0x2b8   :  { %p617_p13 = por %p616_p12, %p615_p11 }
 0x2ba   :  { %p618_p0 = pnand %p617_p13, %p611_p10 }
 0x37d   :  { %v325_v0 = vpop.f32.mrb[2].mxu0 }
 0x37e   :  { %542 = vrcp.f32 %v325_v0  ;;  %v477_v27 = vpop.f32.mrb[3].mxu0 }
 0x388   :  { %v543_v28 = vpop.eup %542 }
 0x389   :  { %v330_v29 = vmul.f32 %v543_v28, %v541_v26 }
 0x38b   :  { %331 = vst [vmem:[#allocation7] sm:$0xff] %v330_v29 }
 0x38c   :  { %621 = shalt.err (!%p618_p0)
}
 0x38d   :  { %s622_s3 = scalar_lea.hbm %s743_s2, 128 }
 0x38e   :  { %p623_p1 = scmp.ne.s32.totalorder %s743_s2, %s622_s3  ;;  %p626_p2 = scmp.lt.u32.totalorder %s622_s3, %s743_s2 }
 0x390   :  { %p628_p3 = pnand %p626_p2, %p623_p1 }
 0x392   :  { %631 = shalt.err (!%p628_p3)
}
 0x393   :  { %341 = dma.vmem_to_hbm [thread:$0]  %s339_s22, 128, %s743_s2, [#allocation4]  }
 0x394   :  { %636 = dma.done.wait [#allocation4], 128  }
 0x395   :  { %637 = vsyncadd [#allocation4], 4294967168 }
 0x396   :  { %638 = dma.done.wait [#allocation9], 128  }
 0x397   :  { %639 = vsyncadd [#allocation9], 4294967168 }
 0x398   :  { %358 = vsyncpa [#allocation3], 1 }
 0x399   :  { %359 = vsyncpa [#allocation6], 1 }
 0x39a   :  { %360 = vsyncpa [#allocation4], 1 }
 0x39b   :  { %361 = vsyncpa [#allocation9], 1 }

</bundles_post_ra>
